<compile_context>
chip_gen: v7x
topology: tpu7x:2x2x1
jax: 0.10.0
libtpu: 0.0.40
codegen_flags: <defaults>
</compile_context>

<pallas_src>
import functools

import jax
import jax.numpy as jnp
from jax.experimental import pallas as pl
from jax.experimental.pallas import tpu as pltpu

_LANE = 128
_SUBLANE = 8


def _round_up(v, m):
    return (v + m - 1) // m * m


def _pick_batch_tile(B):
    """Batch tile: multiple of 8, <= 512 rows, grid of >= 2 steps, and
    (whenever B allows it) an even step count >= 4 so the v7x megacore gets a
    balanced shard per TensorCore with software pipelining inside each."""
    if B <= _SUBLANE:
        return _SUBLANE
    steps = max(4, pl.cdiv(B, 512))
    steps += steps % 2                       # even step count for 2-TC sharding
    return min(512, _round_up(pl.cdiv(B, steps), _SUBLANE))


def _mlp_kernel(x_ref, w_in_ref, b_in_ref, w_h_ref, b_h_ref, w_fc_ref,
                b_fc_ref, o_ref, *, num_layers, fast_sigmoid):
    # x_ref:  (tb, d_in)
    # w_in:   (d_in, Hp)        b_in: (1, Hp)
    # w_h:    (L, Hp, Hp)       b_h:  (L, 1, Hp)
    # w_fc:   (Hp, Op)          b_fc: (1, Op)
    # o_ref:  (tb, Op)          Op is a multiple of 128 (lane-dense stores).
    def sigmoid(z):
        if fast_sigmoid:
            # exp and reciprocal both run on the EUP slot instead of a multi-op
            # VPU Newton divide (bf16 fast path only).
            return pl.reciprocal(1.0 + jnp.exp(-z), approx=True)
        return jax.nn.sigmoid(z)             # exact on the f32 faithful path

    h = sigmoid(
        jnp.dot(x_ref[...], w_in_ref[...], preferred_element_type=jnp.float32)
        + b_in_ref[...])
    for i in range(num_layers):               # static unroll; num_layers small
        h = sigmoid(
            jnp.dot(h.astype(w_h_ref.dtype), w_h_ref[i],
                    preferred_element_type=jnp.float32)
            + b_h_ref[i])
    o_ref[...] = (
        jnp.dot(h.astype(w_fc_ref.dtype), w_fc_ref[...],
                preferred_element_type=jnp.float32)
        + b_fc_ref[...]).astype(o_ref.dtype)


def prepare_params(params, *, num_layers, compute_dtype=jnp.float32):
    """Pad / cast the weights ONCE (hoisted out of the per-call forward path).

    * hidden is only sublane-aligned (multiple of 8): internal activations
      never touch HBM, so lane-padding to 128 would just inflate MXU/EUP work.
    * the output width is lane-padded to a multiple of 128 so the stored
      output tile uses unmasked vst; the zero pad rows/cols guarantee the
      extra lanes contribute nothing and are sliced off in the wrapper.
    """
    w_in, b_in, w_h, b_h, w_fc, b_fc = params
    d_in, hidden = w_in.shape
    out_dim = w_fc.shape[1]
    hp = _round_up(hidden, _SUBLANE)
    op = _round_up(out_dim, _LANE)
    L = max(num_layers, 1)
    cdt = jnp.dtype(compute_dtype)

    def pad2(a, r, c):
        return jnp.pad(a, ((0, r - a.shape[0]), (0, c - a.shape[1]))).astype(cdt)

    arrays = (
        pad2(w_in, d_in, hp),
        pad2(b_in, 1, hp),
        jnp.pad(w_h, ((0, L - w_h.shape[0]),
                      (0, hp - w_h.shape[1]),
                      (0, hp - w_h.shape[2]))).astype(cdt),
        jnp.pad(b_h, ((0, L - b_h.shape[0]), (0, 0),
                      (0, hp - b_h.shape[2]))).astype(cdt),
        pad2(w_fc, hp, op),
        pad2(b_fc, 1, op),
    )
    meta = dict(d_in=d_in, hidden=hidden, out_dim=out_dim, hp=hp, op=op, L=L,
                num_layers=num_layers, compute_dtype=cdt)
    return arrays, meta


def summary_network_forward(x, prepared, *, batch_tile=None):
    """Run the SummaryNetwork forward pass with a Pallas TPU kernel."""
    arrays, meta = prepared
    w_in_p, b_in_p, w_h_p, b_h_p, w_fc_p, b_fc_p = arrays
    B, d_in = x.shape
    assert d_in == meta["d_in"], "input feature size mismatch"
    hp, op, L = meta["hp"], meta["op"], meta["L"]
    num_layers = meta["num_layers"]
    cdt = meta["compute_dtype"]
    is_f32 = cdt == jnp.dtype(jnp.float32)
    out_dtype = jnp.float32 if is_f32 else cdt   # bf16 out halves writeback/VMEM

    # ---- batch tiling ----
    tb = _pick_batch_tile(B) if batch_tile is None else batch_tile
    assert tb % _SUBLANE == 0, "batch_tile must be a multiple of 8"
    B_pad = _round_up(B, tb)
    x_p = x.astype(cdt)
    if B_pad != B:
        x_p = jnp.pad(x_p, ((0, B_pad - B), (0, 0)))

    kernel = functools.partial(_mlp_kernel, num_layers=num_layers,
                               fast_sigmoid=not is_f32)

    # ---- scheduler hint ----
    welem = cdt.itemsize
    oelem = jnp.dtype(out_dtype).itemsize
    weight_bytes = welem * (d_in * hp + hp + L * hp * hp + L * hp + hp * op + op)
    flops = 2 * B_pad * (d_in * hp + num_layers * hp * hp + hp * op)
    transcendentals = B_pad * hp * (num_layers + 1) * (1 if is_f32 else 2)
    bytes_accessed = weight_bytes + welem * B_pad * d_in + oelem * B_pad * op
    cost = pl.CostEstimate(flops=int(flops),
                           transcendentals=int(transcendentals),
                           bytes_accessed=int(bytes_accessed))

    # ---- explicit scoped-VMEM budget (defaults are only 16/32 MiB) ----
    io_bytes = 2 * welem * tb * d_in + 2 * oelem * tb * op   # double-buffered x / out
    act_bytes = 4 * tb * (hp + max(hp, op)) * 2              # f32 activation temporaries
    vmem_est = weight_bytes + io_bytes + act_bytes           # weights single-buffered
    vmem_limit = max(16 << 20, min(64 << 20, int(vmem_est * 1.25)))

    # Grid-invariant weight blocks are single-buffered (constant index_map ->
    # a second buffer is pure VMEM waste); only x / out stay double-buffered.
    one = pl.Buffered(1)
    grid_spec = pltpu.PrefetchScalarGridSpec(
        num_scalar_prefetch=0,
        grid=(B_pad // tb,),
        in_specs=[
            pl.BlockSpec((tb, d_in), lambda i: (i, 0)),                         # x
            pl.BlockSpec((d_in, hp), lambda i: (0, 0), pipeline_mode=one),      # w_in
            pl.BlockSpec((1, hp), lambda i: (0, 0), pipeline_mode=one),         # b_in
            pl.BlockSpec((L, hp, hp), lambda i: (0, 0, 0), pipeline_mode=one),  # w_h
            pl.BlockSpec((L, 1, hp), lambda i: (0, 0, 0), pipeline_mode=one),   # b_h
            pl.BlockSpec((hp, op), lambda i: (0, 0), pipeline_mode=one),        # w_fc
            pl.BlockSpec((1, op), lambda i: (0, 0), pipeline_mode=one),         # b_fc
        ],
        out_specs=pl.BlockSpec((tb, op), lambda i: (i, 0)),
    )

    out_p = pl.pallas_call(
        kernel,
        out_shape=jax.ShapeDtypeStruct((B_pad, op), out_dtype),
        grid_spec=grid_spec,
        compiler_params=pltpu.CompilerParams(
            dimension_semantics=("parallel",),
            vmem_limit_bytes=int(vmem_limit)),
        cost_estimate=cost,
    )(x_p, w_in_p, b_in_p, w_h_p, b_h_p, w_fc_p, b_fc_p)

    # slice off batch padding and output lane padding; return f32
    return out_p[:B, :meta["out_dim"]].astype(jnp.float32)


def init_params(key, input_size, memory_size, hidden_size, num_layers):
    """Deterministic init mirroring torch.nn.Linear default (U(-1/sqrt(fan_in), +))."""
    def linear(k, fan_in, fan_out):
        kw, kb = jax.random.split(k)
        bound = 1.0 / jnp.sqrt(fan_in)
        w = jax.random.uniform(kw, (fan_in, fan_out), jnp.float32, -bound, bound)
        b = jax.random.uniform(kb, (1, fan_out), jnp.float32, -bound, bound)
        return w, b

    keys = jax.random.split(key, num_layers + 2)
    w_in, b_in = linear(keys[0], input_size, hidden_size)
    w_h_list, b_h_list = [], []
    for li in range(num_layers):
        w, b = linear(keys[1 + li], hidden_size, hidden_size)
        w_h_list.append(w)
        b_h_list.append(b)
    if num_layers > 0:
        w_h = jnp.stack(w_h_list, axis=0)            # (L, H, H)
        b_h = jnp.stack(b_h_list, axis=0)            # (L, 1, H)
    else:
        w_h = jnp.zeros((1, hidden_size, hidden_size), jnp.float32)
        b_h = jnp.zeros((1, 1, hidden_size), jnp.float32)
    w_fc, b_fc = linear(keys[-1], hidden_size, memory_size * 2)
    return w_in, b_in, w_h, b_h, w_fc, b_fc


def reference_forward(x, params, num_layers):
    w_in, b_in, w_h, b_h, w_fc, b_fc = params
    h = jax.nn.sigmoid(x @ w_in + b_in)
    for i in range(num_layers):
        h = jax.nn.sigmoid(h @ w_h[i] + b_h[i])
    return h @ w_fc + b_fc


if __name__ == "__main__":
    # small shapes consistent with the module
    input_size = 4
    memory_size = 8
    hidden_size = 32
    num_layers = 2
    batch = 16        # tile heuristic -> 2 grid steps of 8 rows (pipelined)

    key = jax.random.PRNGKey(0)
    k_x, k_p = jax.random.split(key)
    x = jax.random.normal(k_x, (batch, input_size), dtype=jnp.float32)
    params = init_params(k_p, input_size, memory_size, hidden_size, num_layers)

    ref = reference_forward(x, params, num_layers)

    # f32 faithful path (default): weights prepared ONCE and reused.
    prep_f32 = prepare_params(params, num_layers=num_layers)
    out = jax.block_until_ready(summary_network_forward(x, prep_f32))
    assert out.shape == (batch, memory_size * 2)
    assert jnp.allclose(out, ref, atol=1e-5, rtol=1e-5), "f32 mismatch vs reference"

    # bf16 fast path (v6e/v7x: halves weight HBM/VMEM traffic, f32 MXU accum,
    # EUP sigmoid).  Loose tolerance because the original module is float64.
    prep_bf16 = prepare_params(params, num_layers=num_layers,
                               compute_dtype=jnp.bfloat16)
    out_bf16 = jax.block_until_ready(summary_network_forward(x, prep_bf16))
    assert out_bf16.shape == (batch, memory_size * 2)
    assert jnp.allclose(out_bf16, ref, atol=1e-1, rtol=1e-1), "bf16 drifted too far"

    print("KERNEL_OK")
</pallas_src>

<mosaic_0001>
module attributes {stable_mosaic.version = 11 : i64} {
  func.func @_mlp_kernel(%arg0: i32, %arg1: memref<8x4xf32, #tpu.memory_space<vmem>>, %arg2: memref<4x32xf32, #tpu.memory_space<vmem>>, %arg3: memref<1x32xf32, #tpu.memory_space<vmem>>, %arg4: memref<2x32x32xf32, #tpu.memory_space<vmem>>, %arg5: memref<2x1x32xf32, #tpu.memory_space<vmem>>, %arg6: memref<32x128xf32, #tpu.memory_space<vmem>>, %arg7: memref<1x128xf32, #tpu.memory_space<vmem>>, %arg8: memref<8x128xf32, #tpu.memory_space<vmem>>) attributes {dimension_semantics = [#tpu.dimension_semantics<parallel>], iteration_bounds = array<i64: 2>, scalar_prefetch = 0 : i64, scratch_operands = 0 : i64, tpu.core_type = #tpu.core_type<tc>, window_params = [{transform_indices = @transform_0, window_bounds = array<i64: 8, 4>}, {pipeline_mode = #tpu.pipeline_mode<synchronous>, transform_indices = @transform_1, window_bounds = array<i64: 4, 32>}, {pipeline_mode = #tpu.pipeline_mode<synchronous>, transform_indices = @transform_2, window_bounds = array<i64: 1, 32>}, {pipeline_mode = #tpu.pipeline_mode<synchronous>, transform_indices = @transform_3, window_bounds = array<i64: 2, 32, 32>}, {pipeline_mode = #tpu.pipeline_mode<synchronous>, transform_indices = @transform_4, window_bounds = array<i64: 2, 1, 32>}, {pipeline_mode = #tpu.pipeline_mode<synchronous>, transform_indices = @transform_5, window_bounds = array<i64: 32, 128>}, {pipeline_mode = #tpu.pipeline_mode<synchronous>, transform_indices = @transform_6, window_bounds = array<i64: 1, 128>}, {transform_indices = @transform_7, window_bounds = array<i64: 8, 128>}]} {
    %c0 = arith.constant 0 : index
    %c0_0 = arith.constant 0 : index
    %0 = vector.load %arg1[%c0, %c0_0] : memref<8x4xf32, #tpu.memory_space<vmem>>, vector<8x4xf32>
    %c0_1 = arith.constant 0 : index
    %c0_2 = arith.constant 0 : index
    %1 = vector.load %arg2[%c0_1, %c0_2] : memref<4x32xf32, #tpu.memory_space<vmem>>, vector<4x32xf32>
    %cst = arith.constant dense<0.000000e+00> : vector<8x32xf32>
    %2 = tpu.matmul %0, %1, %cst {dimension_numbers = #tpu.dot_dimension_numbers<[1], [0], [0], [1], [0, 0, 1, 1], [], []>} : vector<8x4xf32>, vector<4x32xf32>, vector<8x32xf32> -> vector<8x32xf32>
    %c0_3 = arith.constant 0 : index
    %c0_4 = arith.constant 0 : index
    %3 = vector.load %arg3[%c0_3, %c0_4] : memref<1x32xf32, #tpu.memory_space<vmem>>, vector<1x32xf32>
    %4 = vector.broadcast %3 : vector<1x32xf32> to vector<8x32xf32>
    %5 = arith.addf %2, %4 : vector<8x32xf32>
    %6 = arith.negf %5 : vector<8x32xf32>
    %7 = math.exp %6 : vector<8x32xf32>
    %cst_5 = arith.constant 1.000000e+00 : f32
    %8 = vector.broadcast %cst_5 : f32 to vector<8x32xf32>
    %9 = arith.addf %8, %7 : vector<8x32xf32>
    %10 = arith.divf %8, %9 : vector<8x32xf32>
    %c0_6 = arith.constant 0 : index
    %c0_7 = arith.constant 0 : index
    %c0_8 = arith.constant 0 : index
    %11 = vector.load %arg4[%c0_6, %c0_7, %c0_8] : memref<2x32x32xf32, #tpu.memory_space<vmem>>, vector<1x32x32xf32>
    %12 = vector.shape_cast %11 : vector<1x32x32xf32> to vector<32x32xf32>
    %cst_9 = arith.constant dense<0.000000e+00> : vector<8x32xf32>
    %13 = tpu.matmul %10, %12, %cst_9 {dimension_numbers = #tpu.dot_dimension_numbers<[1], [0], [0], [1], [0, 0, 1, 1], [], []>} : vector<8x32xf32>, vector<32x32xf32>, vector<8x32xf32> -> vector<8x32xf32>
    %c0_10 = arith.constant 0 : index
    %c0_11 = arith.constant 0 : index
    %c0_12 = arith.constant 0 : index
    %14 = vector.load %arg5[%c0_10, %c0_11, %c0_12] : memref<2x1x32xf32, #tpu.memory_space<vmem>>, vector<1x1x32xf32>
    %15 = vector.shape_cast %14 : vector<1x1x32xf32> to vector<1x32xf32>
    %16 = vector.broadcast %15 : vector<1x32xf32> to vector<8x32xf32>
    %17 = arith.addf %13, %16 : vector<8x32xf32>
    %18 = arith.negf %17 : vector<8x32xf32>
    %19 = math.exp %18 : vector<8x32xf32>
    %cst_13 = arith.constant 1.000000e+00 : f32
    %20 = vector.broadcast %cst_13 : f32 to vector<8x32xf32>
    %21 = arith.addf %20, %19 : vector<8x32xf32>
    %22 = arith.divf %20, %21 : vector<8x32xf32>
    %c1 = arith.constant 1 : index
    %c0_14 = arith.constant 0 : index
    %c0_15 = arith.constant 0 : index
    %23 = vector.load %arg4[%c1, %c0_14, %c0_15] : memref<2x32x32xf32, #tpu.memory_space<vmem>>, vector<1x32x32xf32>
    %24 = vector.shape_cast %23 : vector<1x32x32xf32> to vector<32x32xf32>
    %cst_16 = arith.constant dense<0.000000e+00> : vector<8x32xf32>
    %25 = tpu.matmul %22, %24, %cst_16 {dimension_numbers = #tpu.dot_dimension_numbers<[1], [0], [0], [1], [0, 0, 1, 1], [], []>} : vector<8x32xf32>, vector<32x32xf32>, vector<8x32xf32> -> vector<8x32xf32>
    %c1_17 = arith.constant 1 : index
    %c0_18 = arith.constant 0 : index
    %c0_19 = arith.constant 0 : index
    %26 = vector.load %arg5[%c1_17, %c0_18, %c0_19] : memref<2x1x32xf32, #tpu.memory_space<vmem>>, vector<1x1x32xf32>
    %27 = vector.shape_cast %26 : vector<1x1x32xf32> to vector<1x32xf32>
    %28 = vector.broadcast %27 : vector<1x32xf32> to vector<8x32xf32>
    %29 = arith.addf %25, %28 : vector<8x32xf32>
    %30 = arith.negf %29 : vector<8x32xf32>
    %31 = math.exp %30 : vector<8x32xf32>
    %cst_20 = arith.constant 1.000000e+00 : f32
    %32 = vector.broadcast %cst_20 : f32 to vector<8x32xf32>
    %33 = arith.addf %32, %31 : vector<8x32xf32>
    %34 = arith.divf %32, %33 : vector<8x32xf32>
    %c0_21 = arith.constant 0 : index
    %c0_22 = arith.constant 0 : index
    %35 = vector.load %arg6[%c0_21, %c0_22] : memref<32x128xf32, #tpu.memory_space<vmem>>, vector<32x128xf32>
    %cst_23 = arith.constant dense<0.000000e+00> : vector<8x128xf32>
    %36 = tpu.matmul %34, %35, %cst_23 {dimension_numbers = #tpu.dot_dimension_numbers<[1], [0], [0], [1], [0, 0, 1, 1], [], []>} : vector<8x32xf32>, vector<32x128xf32>, vector<8x128xf32> -> vector<8x128xf32>
    %c0_24 = arith.constant 0 : index
    %c0_25 = arith.constant 0 : index
    %37 = vector.load %arg7[%c0_24, %c0_25] : memref<1x128xf32, #tpu.memory_space<vmem>>, vector<1x128xf32>
    %38 = vector.broadcast %37 : vector<1x128xf32> to vector<8x128xf32>
    %39 = arith.addf %36, %38 : vector<8x128xf32>
    %c0_26 = arith.constant 0 : index
    %c0_27 = arith.constant 0 : index
    %40 = vector.load %arg8[%c0_26, %c0_27] : memref<8x128xf32, #tpu.memory_space<vmem>>, vector<8x128xf32>
    tpu.vector_store %arg8[%c0_26, %c0_27], %39 {strides = array<i32>} : memref<8x128xf32, #tpu.memory_space<vmem>>, vector<8x128xf32>,
    return
  }
  func.func @transform_0(%arg0: i32) -> (i32, i32) {
    %c0_i32 = arith.constant 0 : i32
    %c0_i32_0 = arith.constant 0 : i32
    return %arg0, %c0_i32 : i32, i32
  }
  func.func @transform_1(%arg0: i32) -> (i32, i32) {
    %c0_i32 = arith.constant 0 : i32
    %c0_i32_0 = arith.constant 0 : i32
    %c0_i32_1 = arith.constant 0 : i32
    return %c0_i32, %c0_i32_0 : i32, i32
  }
  func.func @transform_2(%arg0: i32) -> (i32, i32) {
    %c0_i32 = arith.constant 0 : i32
    %c0_i32_0 = arith.constant 0 : i32
    %c0_i32_1 = arith.constant 0 : i32
    return %c0_i32, %c0_i32_0 : i32, i32
  }
  func.func @transform_3(%arg0: i32) -> (i32, i32, i32) {
    %c0_i32 = arith.constant 0 : i32
    %c0_i32_0 = arith.constant 0 : i32
    %c0_i32_1 = arith.constant 0 : i32
    %c0_i32_2 = arith.constant 0 : i32
    return %c0_i32, %c0_i32_0, %c0_i32_1 : i32, i32, i32
  }
  func.func @transform_4(%arg0: i32) -> (i32, i32, i32) {
    %c0_i32 = arith.constant 0 : i32
    %c0_i32_0 = arith.constant 0 : i32
    %c0_i32_1 = arith.constant 0 : i32
    %c0_i32_2 = arith.constant 0 : i32
    return %c0_i32, %c0_i32_0, %c0_i32_1 : i32, i32, i32
  }
  func.func @transform_5(%arg0: i32) -> (i32, i32) {
    %c0_i32 = arith.constant 0 : i32
    %c0_i32_0 = arith.constant 0 : i32
    %c0_i32_1 = arith.constant 0 : i32
    return %c0_i32, %c0_i32_0 : i32, i32
  }
  func.func @transform_6(%arg0: i32) -> (i32, i32) {
    %c0_i32 = arith.constant 0 : i32
    %c0_i32_0 = arith.constant 0 : i32
    %c0_i32_1 = arith.constant 0 : i32
    return %c0_i32, %c0_i32_0 : i32, i32
  }
  func.func @transform_7(%arg0: i32) -> (i32, i32) {
    %c0_i32 = arith.constant 0 : i32
    %c0_i32_0 = arith.constant 0 : i32
    return %arg0, %c0_i32 : i32, i32
  }
}

</mosaic_0001>

<bundles_post_ra>
// kernel: tpu_custom_call.1
= control target key start
LH: loop header
LB: loop body
LE: loop exit
PB: predicated region body
PF: predicated region fallthrough
CT: control target
= control target key end

     0   :  { %12 = vsyncpa [#allocation3], 0  ;;  %s1314_s0 = inlined_call_operand.vmem [shape: f32[16,4], index: 0, kind: input, shape index: {}]   ;;  %s1315_s1 = inlined_call_operand.vmem [shape: f32[4,32], index: 1, kind: input, shape index: {}]   ;;  %s1316_s2 = inlined_call_operand.hbm [shape: f32[1,32], index: 2, kind: input, shape index: {}]   ;;  %s1317_s3 = inlined_call_operand.hbm [shape: f32[2,32,32], index: 3, kind: input, shape index: {}]   ;;  %s1318_s4 = inlined_call_operand.vmem [shape: f32[2,1,32], index: 4, kind: input, shape index: {}]   ;;  %s1319_s5 = inlined_call_operand.vmem [shape: f32[32,128], index: 5, kind: input, shape index: {}]   ;;  %s1320_s6 = inlined_call_operand.vmem [shape: f32[1,128], index: 6, kind: input, shape index: {}]   ;;  %s1321_s7 = inlined_call_operand.hbm [shape: f32[16,128], index: 7, kind: output, shape index: {}]  }
   0x1   :  { %13 = vsyncpa [#allocation6], 0 }
   0x2   :  { %14 = vsyncpa [#allocation4], 0 }
   0x3   :  { %16 = vsyncpa [#allocation4 + $0x1], 0  ;;  %s1111_s24 = smov 0   ;;  %s1113_s25 = smov 0  }
   0x4   :  { %s1115_s26 = smov 0   ;;  %s1117_s27 = smov 0  }
   0x5 LB: > { %s1132_s28 = sadd.s32 4294967295, %s1061_s27   ;;  %s758_s29 = sadd.s32 4294967294, %s1061_s27   ;;  %s1061_s27 = sphi %s1117_s27, %s1339_s27   ;;  %s1057_s26 = sphi %s1115_s26, %s1338_s26   ;;  %s1053_s25 = sphi %s1113_s25, %s1337_s25   ;;  %s1049_s24 = sphi %s1111_s24, %s1336_s24  }
   0x6   : > { %s1136_s30 = sadd.s32 1, %s1061_s27   ;;  %s181_s8 = sadd.s32 1, %s1057_s26 }
   0x7   : > { %s178_s9 = ssub.s32 %s1061_s27, %s1136_s30  ;;  %p191_p0 = scmp.ne.s32.totalorder %s1057_s26, %s1053_s25 }
   0x8   : > { %p179_p1 = scmp.eq.s32.totalorder %s178_s9, 0  ;;  %p192_p2 = scmp.eq.s32.totalorder %s1132_s28, 1 }
   0x9   : > { %p197_p3 = scmp.ne.s32.totalorder %s1053_s25, %s1049_s24  ;;  %p198_p4 = scmp.eq.s32.totalorder %s758_s29, 1 }
   0xa   : > { %s1147_s10 = scalar_select %p179_p1, %s1057_s26, %s181_s8  }
   0xb   : > { %p1149_p5 = por %p192_p2, %p191_p0  ;;  %p1153_p6 = por %p198_p4, %p197_p3 }
   0xc   : > { %p759_p7 = scmp.ge.s32.totalorder %s1061_s27, 1  ;;  %p205_p8 = scmp.lt.s32.totalorder %s1061_s27, 3 }
   0xd   : > { %s1325_s11 = scalar_select %p1149_p5, 1, 0 }
   0xe   : > { %s1326_s12 = scalar_select %p1153_p6, 1, 0 }
   0xf   : > { %p1322_p9 = scmp.eq.s32.totalorder %s1132_s28, 0  ;;  %p1160_p10 = pnand %p759_p7, %p205_p8 }
  0x10   : > { %s1063_s14 = smov [#allocation2]   ;;  %s1064_s16 = smov [#allocation5]  }
  0x11   : > { %s1327_s13 = scalar_select %p1160_p10, 1, 0 }
  0x12   : > { %s221_s15 = sshll.u32 %s1063_s14, 4  ;;  %p868_p11 = pneg %p1160_p10  ;;  %s222_s15 = int_to_ptr.vmem [resolvable:$true] %s221_s15 }
  0x13   : > { %s231_s17 = sshll.u32 %s1064_s16, 4  ;;  %s935_s21 = scalar_lea.hbm %s1316_s2, 16  ;;  %s1172_s17 = int_to_ptr.vmem [resolvable:$true] %s231_s17 }
  0x14   : > { %p1168_p12 = pnand %p1322_p9, %p868_p11  ;;  %p936_p13 = scmp.ne.s32.totalorder %s1316_s2, %s935_s21 }
  0x15   : > { %p942_p3 = scmp.lt.u32.totalorder %s935_s21, %s1316_s2 }
  0x16   : > { %p937_p0 = pneg %p1168_p12 }
  0x18   : > { %p938_p1 = pnand %p937_p0, %p936_p13 }
  0x1a   : > { %p939_p2 = pneg %p938_p1 }
  0x1c   : > { %p944_p4 = pnand %p942_p3, %p939_p2 }
  0x1e   : > { %947 = shalt.err (!%p944_p4)
}
  0x1f   : > { %s948_s9 = scalar_lea.vmem %s222_s15, 16  ;;  %s955_s14 = scalar_lea.vmem %s222_s15, 32 }
  0x20   : > { %p949_p7 = scmp.ne.s32.totalorder %s222_s15, %s948_s9  ;;  %p956_p9 = scmp.lt.s32.totalorder %s222_s15, %s222_s15 }
  0x21   : > { %p957_p6 = scmp.lt.s32.totalorder %s955_s14, %s948_s9 }
  0x22   : > { %p951_p8 = pnand %p949_p7, %p937_p0 }
  0x23   : > { %p958_p5 = por %p957_p6, %p956_p9 }
  0x24   : > { %p952_p11 = pneg %p951_p8 }
  0x26   : > { %p959_p10 = pnand %p958_p5, %p952_p11 }
  0x28   : > { %962 = shalt.err (!%p959_p10)
}
  0x29   : > { %871 = dma.hbm_to_vmem [thread:$0]  (!%p1168_p12), %s1316_s2, 16, %s222_s15, [#allocation3]  }
  0x2a   : > { %s963_s22 = scalar_lea.hbm %s1317_s3, 1024 }
  0x2b   : > { %p964_p13 = scmp.ne.s32.totalorder %s1317_s3, %s963_s22  ;;  %p970_p9 = scmp.lt.u32.totalorder %s963_s22, %s1317_s3 }
  0x2d   : > { %p966_p6 = pnand %p964_p13, %p937_p0 }
  0x2f   : > { %p967_p5 = pneg %p966_p6 }
  0x31   : > { %p972_p10 = pnand %p970_p9, %p967_p5 }
  0x33   : > { %975 = shalt.err (!%p972_p10)
}
  0x34   : > { %s976_s15 = scalar_lea.vmem %s1172_s17, 1024  ;;  %p984_p4 = scmp.lt.s32.totalorder %s1172_s17, %s1172_s17 }
  0x35   : > { %p977_p1 = scmp.ne.s32.totalorder %s1172_s17, %s976_s15  ;;  %p985_p7 = scmp.lt.s32.totalorder %s976_s15, %s976_s15 }
  0x37   : > { %p979_p2 = pnand %p977_p1, %p937_p0  ;;  %p986_p8 = por %p985_p7, %p984_p4 }
  0x39   : > { %p980_p3 = pneg %p979_p2 }
  0x3b   : > { %p987_p11 = pnand %p986_p8, %p980_p3 }
  0x3d   : > { %990 = shalt.err (!%p987_p11)
}
  0x3e   : > { %s1065_s14 = smov 128   ;;  %s1066_s16 = smov 8  }
  0x3f   : > { %874 = dma.hbm_to_vmem [thread:$0]  (!%p1168_p12), %s1317_s3, 1024, %s1172_s17, [#allocation6], %s1065_s14, %s1065_s14, %s1066_s16  }
  0x40   : > { %p1329_p13 = scmp.ne.s32.totalorder %s1327_s13, 0 }
  0x41   : > { %p1330_p0 = scmp.eq.s32.totalorder (!%p1329_p13), %s1132_s28, 0 }
  0x42   : > { %263 = sbr.rel (%p1329_p13) target bundleno = 1032 (0x408), region = 48 }
  0x49   : > { %1036 = dma.done.wait (%p1330_p0), [#allocation3], 16   ;;  %p1331_p6 = pmov %p1330_p0 }
  0x4a   : > { %p1332_p5 = pmov %p1330_p0 }
  0x4b   : > { %1038 = vsyncadd (%p1331_p6), [#allocation3], 4294967280 }
  0x4c   : > { %1040 = dma.done.wait (%p1332_p5), [#allocation6], 1024   ;;  %p1333_p9 = pmov %p1330_p0 }
  0x4d   : > { %p298_p10 = scmp.lt.s32.totalorder %s1132_s28, 1  ;;  %v1067_v0 = vmov 0.0   ;;  %vm1068_vm0 = vmmov 0   ;;  %vm315_vm1 = vcmask 1043456   ;;  %vm311_vm2 = vcmask 31744   ;;  %v395_v3 = vld [vmem:[#allocation5] sm:$0xff] }
  0x4e   : > { %1042 = vsyncadd (%p1333_p9), [#allocation6], 4294966272  ;;  %802 = vmatprep.subr.mxu0 %v1067_v0  ;;  %804 = vmatprep.mubr.msk.f32.mxu0 %vm1068_vm0, %v1067_v0  ;;  %v303_v1 = vld [vmem:[%s1315_s1] sm:$0xf]  ;;  %v396_v4 = vld [vmem:[#allocation5 + $0x8] sm:$0xff]  ;;  %v1069_v6 = vmov 0.0|0.0  }
  0x4f   : > { %s299_s13 = scalar_select %p298_p10, %s1132_s28, 1  ;;  %815 = vmatprep.mubr.msk.f32.mxu1 %vm1068_vm0, %v1067_v0  ;;  %803 = vmatpush3.msk.msra.mxu0 %vm315_vm1, %v303_v1  ;;  %v397_v5 = vld [vmem:[#allocation5 + $0x10] sm:$0xff]  ;;  %v841_v7 = vpack.c.bf16 %v396_v4, %v395_v3  ;;  %v398_v8 = vld [vmem:[#allocation5 + $0x18] sm:$0xff]  ;;  %vm406_vm3 = vcmask 261120   ;;  %v487_v18 = vld [vmem:[#allocation5 + $0x20] sm:$0xff] }
  0x50   : > { %840 = vmatprep.subr.bf16.mxu1 %v1069_v6  ;;  %846 = vmatprep.subr.bf16.mxu0 %v1069_v6  ;;  %v844_v9 = vpack.c.bf16 %v398_v8, %v397_v5  ;;  %v768_v10 = vld [vmem:[#allocation2] ss:$0 sm:$0xff]  ;;  %v488_v19 = vld [vmem:[#allocation5 + $0x28] sm:$0xff]  ;;  %v489_v20 = vld [vmem:[#allocation5 + $0x30] sm:$0xff]  ;;  %s295_s23 = sand.u32 1, %s1053_s25   ;;  %s782_s15 = sshll.u32 %s1132_s28, 7 }
  0x51   : > { %s767_s17 = sshll.u32 %s299_s13, 3  ;;  %842 = vmatpush3.bf16.msra.mxu1 %v841_v7  ;;  %v847_v21 = vpack.c.bf16 %v488_v19, %v487_v18  ;;  %v490_v22 = vld [vmem:[#allocation5 + $0x38] sm:$0xff]  ;;  %v579_v33 = vld [vmem:[%s1319_s5 + $0x8] sm:$0xff]  ;;  %v580_v34 = vld [vmem:[%s1319_s5 + $0x10] sm:$0xff]  ;;  %s766_s29 = sshll.u32 %s295_s23, 3 }
  0x52   : > { %s301_s22 = scalar_lea.vmem %s1314_s0, %s767_s17  ;;  %843 = vmatprep.subr.bf16.mxu1 %v1069_v6  ;;  %v850_v23 = vpack.c.bf16 %v490_v22, %v489_v20  ;;  %v772_v24 = vld [vmem:[%s1318_s4] ss:$0 sm:$0xff]  ;;  %v581_v36 = vld [vmem:[%s1319_s5 + $0x18] sm:$0xff]  ;;  %v776_v38 = vld [vmem:[%s1318_s4 + $0x1] ss:$0 sm:$0xff]  ;;  %s297_s14 = scalar_lea.vmem [#allocation7], %s766_s29 }
  0x53   : > { %v302_v2 = vld [vmem:[%s301_s22] sm:$0xff]  ;;  %v856_v37 = vpack.c.bf16 %v581_v36, %v580_v34  ;;  %s677_s16 = sshll.u32 %s297_s14, 4  ;;  %s1272_s13 = scalar_lea.hbm %s1321_s7, %s782_s15  ;;  %s1274_s16 = int_to_ptr.vmem [resolvable:$true] %s677_s16 }
  0x54   : > { %805 = vmatmul.mubr.msk.f32.vlgmr.msra.gmra.mrb[0].mxu0 %vm311_vm2, %v302_v2  ;;  %v578_v32 = vld [vmem:[%s1319_s5] sm:$0xff]  ;;  %s664_s17 = scalar_lea.sflag [#allocation4], %s295_s23  ;;  %s991_s18 = scalar_lea.vmem %s1274_s16, 128 }
  0x55   : > { %826 = vmatprep.mubr.msk.f32.mxu0 %vm1068_vm0, %v1067_v0  ;;  %845 = vmatpush3.bf16.msra.mxu1 %v844_v9  ;;  %v853_v35 = vpack.c.bf16 %v579_v33, %v578_v32  ;;  %v779_v46 = vld [vmem:[%s1320_s6] ss:$0 sm:$0xff]  ;;  %p992_p12 = scmp.ne.s32.totalorder %s1274_s16, %s991_s18  ;;  %p1334_p1 = scmp.ne.s32.totalorder %s1325_s11, 0 }
  0x56   : > { %852 = vmatprep.subr.bf16.mxu1 %v1069_v6  ;;  %848 = vmatpush3.bf16.msra.mxu0 %v847_v21  ;;  %s1070_s28 = smov [#allocation7]  }
  0x57   : > { %849 = vmatprep.subr.bf16.mxu0 %v1069_v6  ;;  %p993_p2 = pnand %p992_p12, %p1334_p1  ;;  %s995_s21 = sshll.u32 %s1070_s28, 4  ;;  %s996_s21 = int_to_ptr.vmem [resolvable:$false] %s995_s21 }
  0x58   : > { %s997_s22 = scalar_lea.vmem %s996_s21, 256  ;;  %p998_p4 = scmp.lt.s32.totalorder %s1274_s16, %s996_s21 }
  0x59   : > { %p994_p3 = pneg %p993_p2  ;;  %p999_p7 = scmp.lt.s32.totalorder %s997_s22, %s991_s18 }
  0x5a   : > { %851 = vmatpush3.bf16.msra.mxu0 %v850_v23 }
  0x5b   : > { %p1000_p8 = por %p999_p7, %p998_p4 }
  0x5d   : > { %p1001_p11 = pnand %p1000_p8, %p994_p3 }
 0x127   : > { %v385_v11 = vpop.f32.mrb[0].mxu0 }
 0x128   : > { %v386_v12 = vadd.f32 %v768_v10, %v385_v11  ;;  %v806_v13 = vpop.f32.mrb[1].mxu0 }
 0x12a   : > { %v771_v14 = vmul.f32 -1.442695, %v386_v12 }
 0x12c   : > { %923 = vpow2.f32 %v771_v14 }
 0x136   : > { %v924_v15 = vpop.eup %923 }
 0x137   : > { %v392_v16 = vadd.f32 1.0, %v924_v15 }
 0x139   : > { %925 = vrcp.f32 %v392_v16 }
 0x143   : > { %v926_v17 = vpop.eup %925 }
 0x144   : > { %816 = vmatmul.mubr.msk.f32.vlgmr.msra.gmra.mrb[0].mxu1 %vm406_vm3, %v926_v17 }
 0x145   : > { %837 = vmatprep.mubr.msk.f32.mxu1 %vm1068_vm0, %v1067_v0  ;;  %854 = vmatpush3.bf16.msra.mxu1 %v853_v35 }
 0x146   : > { %855 = vmatprep.subr.bf16.mxu1 %v1069_v6 }
 0x149   : > { %857 = vmatpush3.bf16.msra.mxu1 %v856_v37 }
 0x217   : > { %v476_v25 = vpop.f32.mrb[0].mxu1 }
 0x218   : > { %v477_v26 = vadd.f32 %v772_v24, %v476_v25  ;;  %v817_v27 = vpop.f32.mrb[1].mxu1 }
 0x21a   : > { %v774_v28 = vmul.f32 -1.442695, %v477_v26 }
 0x21c   : > { %927 = vpow2.f32 %v774_v28 }
 0x226   : > { %v928_v29 = vpop.eup %927 }
 0x227   : > { %v483_v30 = vadd.f32 1.0, %v928_v29 }
 0x229   : > { %929 = vrcp.f32 %v483_v30 }
 0x233   : > { %v930_v31 = vpop.eup %929 }
 0x234   : > { %827 = vmatmul.mubr.msk.f32.vlgmr.msra.gmra.mrb[2].mxu0 %vm406_vm3, %v930_v31 }
 0x307   : > { %v568_v39 = vpop.f32.mrb[2].mxu0 }
 0x308   : > { %v569_v40 = vadd.f32 %v776_v38, %v568_v39  ;;  %v828_v41 = vpop.f32.mrb[3].mxu0 }
 0x30a   : > { %v778_v42 = vmul.f32 -1.442695, %v569_v40 }
 0x30c   : > { %931 = vpow2.f32 %v778_v42 }
 0x316   : > { %v932_v43 = vpop.eup %931 }
 0x317   : > { %v575_v44 = vadd.f32 1.0, %v932_v43 }
 0x319   : > { %933 = vrcp.f32 %v575_v44 }
 0x323   : > { %v934_v45 = vpop.eup %933 }
 0x324   : > { %838 = vmatmul.mubr.msk.f32.vlgmr.msra.gmra.mrb[2].mxu1 %vm406_vm3, %v934_v45 }
 0x3f7   : > { %v658_v47 = vpop.f32.mrb[2].mxu1 }
 0x3f8   : > { %v659_v48 = vadd.f32 %v779_v46, %v658_v47  ;;  %v839_v49 = vpop.f32.mrb[3].mxu1 }
 0x3fa   : > { %662 = vst [vmem:[%s297_s14] sm:$0xff] %v659_v48 }
 0x3fb   : > { %1004 = shalt.err (!%p1001_p11)
}
 0x3fc   : > { %s1005_s23 = scalar_lea.hbm %s1272_s13, 128  ;;  %s1009_s9 = scalar_lea.hbm %s1321_s7, 256 }
 0x3fd   : > { %p1006_p13 = scmp.ne.s32.totalorder %s1272_s13, %s1005_s23  ;;  %p1010_p5 = scmp.lt.u32.totalorder %s1272_s13, %s1321_s7 }
 0x3fe   : > { %p1011_p9 = scmp.lt.u32.totalorder %s1009_s9, %s1005_s23  ;;  %p1013_p12 = scmp.lt.u32.totalorder %s1005_s23, %s1272_s13 }
 0x3ff   : > { %p1007_p0 = pnand %p1006_p13, %p1334_p1 }
 0x400   : > { %p1012_p10 = por %p1011_p9, %p1010_p5 }
 0x401   : > { %p1008_p6 = pneg %p1007_p0 }
 0x402   : > { %p1014_p2 = por %p1013_p12, %p1012_p10 }
 0x404   : > { %p1015_p3 = pnand %p1014_p2, %p1008_p6 }
 0x406   : > { %1018 = shalt.err (!%p1015_p3)
}
 0x407   : > { %866 = dma.vmem_to_hbm [thread:$0]  (%p1334_p1), %s1274_s16, 128, %s1272_s13, %s664_s17  }
 0x408 PF: > { %p883_p4 = scmp.ge.s32.totalorder %s1061_s27, 2  ;;  %s689_s19 = sand.u32 1, %s1049_s24  }
 0x409   : > { %p1335_p7 = scmp.ne.s32.totalorder %s1326_s12, 0  ;;  %s690_s20 = scalar_lea.sflag [#allocation4], %s689_s19 }
 0x40b   : > { %p876_p8 = pnand %p883_p4, %p1335_p7 }
 0x40d   : > { %1044 = dma.done.wait (!%p876_p8), %s690_s20, 128  }
 0x40e   : > { %1046 = vsyncadd (!%p876_p8), %s690_s20, 4294967168  ;;  %p19_p11 = scmp.ge.s32.totalorder %s1136_s30, 4   ;;  %s1336_s24 = smov %s1053_s25 }
 0x40f   : > { %s1337_s25 = smov %s1057_s26  ;;  %s1338_s26 = smov %s1147_s10 }
 0x410   : > { %s1339_s27 = smov %s1136_s30  ;;  %21 = sbr.rel (!%p19_p11) target bundleno = 5 (0x5), region = 94 }
 0x417   :  { %695 = vsyncpa [#allocation3], 1 }
 0x418   :  { %697 = vsyncpa [#allocation3 + $0x1], 1 }
 0x419   :  { %698 = vsyncpa [#allocation6], 1 }
 0x41a   :  { %699 = vsyncpa [#allocation4], 1 }
 0x41b   :  { %701 = vsyncpa [#allocation4 + $0x1], 1 }

</bundles_post_ra>
